<compile_context>
chip_gen: v7x
topology: tpu7x:2x2x1
jax: 0.10.0
libtpu: 0.0.40
codegen_flags: <defaults>
</compile_context>

<pallas_src>
import functools

import numpy as np

import jax
import jax.numpy as jnp
from jax.experimental import pallas as pl
from jax.experimental.pallas import tpu as pltpu


_ROW_GRANULE = 2048  # 16 sublanes x 128 lanes worth of rows (bf16-safe tiling)


def _round_up(x, m):
    return ((x + m - 1) // m) * m


def _focal_loss_kernel(preds_ref, labels_ref, out_ref, *, alpha, gamma,
                       n_rows, n_rows_padded, tile_rows, approx_recip):
    # preds_ref:  (C, R8, 128)  logits (f32 or bf16), one dense plane per class
    # labels_ref: (R8, 128)     int32 class ids
    # out_ref:    (8, 128)      f32 per-tile partial sums
    C = preds_ref.shape[0]
    R8 = labels_ref.shape[0]
    lbl = labels_ref[...]

    # pass 1: per-row max over classes (dense VPU maxes, static unroll over C)
    m = preds_ref[0].astype(jnp.float32)
    for c in range(1, C):
        m = jnp.maximum(m, preds_ref[c].astype(jnp.float32))

    # pass 2: softmax denominator + label-class gathers + alpha gather,
    # all sharing the same per-class compare.
    zeros = jnp.zeros_like(m)
    denom = zeros
    x_y = zeros          # shifted logit of the label class
    e_y = zeros          # exp(shifted) of the label class
    w = zeros            # alpha[label]
    for c in range(C):
        sc = preds_ref[c].astype(jnp.float32) - m
        ec = jnp.exp(sc)
        denom = denom + ec
        hit = lbl == c
        x_y = jnp.where(hit, sc, x_y)
        e_y = jnp.where(hit, ec, e_y)
        w = jnp.where(hit, alpha[c], w)

    logpt = x_y - jnp.log(denom)                        # <= 0
    if approx_recip:
        pt = e_y * pl.reciprocal(denom, approx=True)    # v7x: spare the EUP
    else:
        pt = e_y / denom
    omp = jnp.maximum(1.0 - pt, 0.0)                    # clamp (rounding / approx)

    g = float(gamma)
    if g == 0.0:
        mod = jnp.ones_like(omp)
    elif g.is_integer() and 0.0 < g <= 8.0:
        mod = omp
        for _ in range(int(g) - 1):
            mod = mod * omp
    else:
        mod = jnp.power(omp, g)

    loss = -(w * mod * logpt)                           # (R8, 128)

    if n_rows != n_rows_padded:
        # explicit validity mask for the padded tail (padded labels hit class
        # 0 and would otherwise contribute a real, nonzero loss)
        row = (pl.program_id(0) * tile_rows
               + jax.lax.broadcasted_iota(jnp.int32, (R8, 128), 0) * 128
               + jax.lax.broadcasted_iota(jnp.int32, (R8, 128), 1))
        loss = jnp.where(row < n_rows, loss, 0.0)

    # fold (R8,128) -> (8,128) with plain vreg adds; wrapper finishes the sum
    out_ref[...] = jnp.sum(loss.reshape(R8 // 8, 8, 128), axis=0)


def focal_loss_forward(preds, labels, alpha, gamma=2.0, size_average=True,
                       tile_rows=131072, approx_recip=False):
    """Pallas focal loss forward.

    preds:  [..., C] float logits (f32 or bf16)
    labels: [...]    int class ids (preds leading dims)
    alpha:  length-C per-class weights (static: list / np / jnp array)
    """
    C = preds.shape[-1]
    preds2 = preds.reshape(-1, C)
    if preds2.dtype not in (jnp.bfloat16, jnp.float32):
        preds2 = preds2.astype(jnp.float32)
    labels1 = labels.reshape(-1).astype(jnp.int32)
    n_rows = preds2.shape[0]

    alpha_t = tuple(float(a) for a in
                    np.asarray(alpha, dtype=np.float32).reshape(-1))
    assert len(alpha_t) == C, (len(alpha_t), C)

    # --- row tiling ---------------------------------------------------------
    n_min = _round_up(n_rows, _ROW_GRANULE)
    bytes_per_row = C * preds2.dtype.itemsize + 4          # logits + labels
    vmem_budget = 12 * 1024 * 1024                          # double-buffered inputs
    tile_cap = max(_ROW_GRANULE,
                   (min(int(tile_rows), vmem_budget // (2 * bytes_per_row))
                    // _ROW_GRANULE) * _ROW_GRANULE)
    num_tiles = max(1, -(-n_min // tile_cap))
    if num_tiles == 1 and n_min >= 2 * _ROW_GRANULE:
        num_tiles = 2                                       # v7x: feed both TCs
    tile_r = _round_up(-(-n_min // num_tiles), _ROW_GRANULE)
    n_pad = tile_r * num_tiles
    pad = n_pad - n_rows

    # --- layout: classes -> leading planes, rows -> lane-dense (., 128) -----
    # TODO(synk): if the producer can emit a [C, rows] slab directly, consume
    # it here and skip this transpose/pad (XLA fuses transpose+pad+reshape
    # into a single copy, but it is still one extra HBM pass over preds).
    preds_t = jnp.pad(preds2.T, ((0, 0), (0, pad))).reshape(C, n_pad // 128, 128)
    labels_p = jnp.pad(labels1, (0, pad)).reshape(n_pad // 128, 128)

    kernel = functools.partial(
        _focal_loss_kernel, alpha=alpha_t, gamma=float(gamma), n_rows=n_rows,
        n_rows_padded=n_pad, tile_rows=tile_r, approx_recip=bool(approx_recip))

    r8 = tile_r // 128
    partials = pl.pallas_call(
        kernel,
        out_shape=jax.ShapeDtypeStruct((num_tiles * 8, 128), jnp.float32),
        grid=(num_tiles,),
        in_specs=[
            pl.BlockSpec((C, r8, 128), lambda i: (0, i, 0)),   # class planes
            pl.BlockSpec((r8, 128), lambda i: (i, 0)),         # labels
        ],
        out_specs=pl.BlockSpec((8, 128), lambda i: (i, 0)),
        compiler_params=pltpu.CompilerParams(
            dimension_semantics=("parallel",),
            vmem_limit_bytes=32 * 1024 * 1024,
        ),
    )(preds_t, labels_p)

    total = jnp.sum(partials)
    if size_average:
        return total / jnp.float32(n_rows)
    return total


def make_alpha(alpha=0.25, num_classes=3):
    # matches nn.Module __init__: scalar alpha -> [alpha, 1-alpha, 1-alpha, ...]
    a = np.full((num_classes,), 1.0 - alpha, dtype=np.float32)
    a[0] = alpha
    return a


if __name__ == "__main__":
    num_classes = 3
    gamma = 2.0
    alpha_vec = make_alpha(alpha=0.25, num_classes=num_classes)

    key = jax.random.PRNGKey(0)
    kp, kl = jax.random.split(key)
    B, N = 2, 8
    preds = jax.random.normal(kp, (B, N, num_classes), dtype=jnp.float32)
    labels = jax.random.randint(kl, (B, N), 0, num_classes, dtype=jnp.int32)

    loss = focal_loss_forward(preds, labels, alpha_vec, gamma=gamma,
                              size_average=True)
    loss = jax.block_until_ready(loss)

    # pure-JAX reference check (same math as the PyTorch module)
    p2 = preds.reshape(-1, num_classes)
    l1 = labels.reshape(-1)
    sm = jax.nn.softmax(p2, axis=1)
    lsm = jnp.log(sm)
    pt = sm[jnp.arange(p2.shape[0]), l1]
    lpt = lsm[jnp.arange(p2.shape[0]), l1]
    at = jnp.asarray(alpha_vec)[l1]
    ref = jnp.mean(-at * jnp.power(1.0 - pt, gamma) * lpt)

    assert jnp.allclose(loss, ref, rtol=1e-5, atol=1e-6), (loss, ref)
    print("KERNEL_OK")
</pallas_src>

<mosaic_0001>
module attributes {stable_mosaic.version = 11 : i64} {
  func.func @_focal_loss_kernel(%arg0: i32, %arg1: memref<3x16x128xf32, #tpu.memory_space<vmem>>, %arg2: memref<16x128xi32, #tpu.memory_space<vmem>>, %arg3: memref<8x128xf32, #tpu.memory_space<vmem>>) attributes {dimension_semantics = [#tpu.dimension_semantics<parallel>], iteration_bounds = array<i64: 1>, scalar_prefetch = 0 : i64, scratch_operands = 0 : i64, tpu.core_type = #tpu.core_type<tc>, window_params = [{transform_indices = @transform_0, window_bounds = array<i64: 3, 16, 128>}, {transform_indices = @transform_1, window_bounds = array<i64: 16, 128>}, {transform_indices = @transform_2, window_bounds = array<i64: 8, 128>}]} {
    %c0 = arith.constant 0 : index
    %c0_0 = arith.constant 0 : index
    %0 = vector.load %arg2[%c0, %c0_0] : memref<16x128xi32, #tpu.memory_space<vmem>>, vector<16x128xi32>
    %c0_1 = arith.constant 0 : index
    %c0_2 = arith.constant 0 : index
    %c0_3 = arith.constant 0 : index
    %1 = vector.load %arg1[%c0_1, %c0_2, %c0_3] : memref<3x16x128xf32, #tpu.memory_space<vmem>>, vector<1x16x128xf32>
    %2 = vector.shape_cast %1 : vector<1x16x128xf32> to vector<16x128xf32>
    %c1 = arith.constant 1 : index
    %c0_4 = arith.constant 0 : index
    %c0_5 = arith.constant 0 : index
    %3 = vector.load %arg1[%c1, %c0_4, %c0_5] : memref<3x16x128xf32, #tpu.memory_space<vmem>>, vector<1x16x128xf32>
    %4 = vector.shape_cast %3 : vector<1x16x128xf32> to vector<16x128xf32>
    %5 = arith.maximumf %2, %4 : vector<16x128xf32>
    %c2 = arith.constant 2 : index
    %c0_6 = arith.constant 0 : index
    %c0_7 = arith.constant 0 : index
    %6 = vector.load %arg1[%c2, %c0_6, %c0_7] : memref<3x16x128xf32, #tpu.memory_space<vmem>>, vector<1x16x128xf32>
    %7 = vector.shape_cast %6 : vector<1x16x128xf32> to vector<16x128xf32>
    %8 = arith.maximumf %5, %7 : vector<16x128xf32>
    %cst = arith.constant 0.000000e+00 : f32
    %9 = vector.broadcast %cst : f32 to vector<16x128xf32>
    %c0_8 = arith.constant 0 : index
    %c0_9 = arith.constant 0 : index
    %c0_10 = arith.constant 0 : index
    %10 = vector.load %arg1[%c0_8, %c0_9, %c0_10] : memref<3x16x128xf32, #tpu.memory_space<vmem>>, vector<1x16x128xf32>
    %11 = vector.shape_cast %10 : vector<1x16x128xf32> to vector<16x128xf32>
    %12 = arith.subf %11, %8 : vector<16x128xf32>
    %13 = math.exp %12 : vector<16x128xf32>
    %14 = arith.addf %9, %13 : vector<16x128xf32>
    %c0_i32 = arith.constant 0 : i32
    %15 = vector.broadcast %c0_i32 : i32 to vector<16x128xi32>
    %16 = arith.cmpi eq, %0, %15 : vector<16x128xi32>
    %17 = arith.select %16, %12, %9 : vector<16x128xi1>, vector<16x128xf32>
    %18 = arith.select %16, %13, %9 : vector<16x128xi1>, vector<16x128xf32>
    %cst_11 = arith.constant 2.500000e-01 : f32
    %19 = vector.broadcast %cst_11 : f32 to vector<16x128xf32>
    %20 = arith.select %16, %19, %9 : vector<16x128xi1>, vector<16x128xf32>
    %c1_12 = arith.constant 1 : index
    %c0_13 = arith.constant 0 : index
    %c0_14 = arith.constant 0 : index
    %21 = vector.load %arg1[%c1_12, %c0_13, %c0_14] : memref<3x16x128xf32, #tpu.memory_space<vmem>>, vector<1x16x128xf32>
    %22 = vector.shape_cast %21 : vector<1x16x128xf32> to vector<16x128xf32>
    %23 = arith.subf %22, %8 : vector<16x128xf32>
    %24 = math.exp %23 : vector<16x128xf32>
    %25 = arith.addf %14, %24 : vector<16x128xf32>
    %c1_i32 = arith.constant 1 : i32
    %26 = vector.broadcast %c1_i32 : i32 to vector<16x128xi32>
    %27 = arith.cmpi eq, %0, %26 : vector<16x128xi32>
    %28 = arith.select %27, %23, %17 : vector<16x128xi1>, vector<16x128xf32>
    %29 = arith.select %27, %24, %18 : vector<16x128xi1>, vector<16x128xf32>
    %cst_15 = arith.constant 7.500000e-01 : f32
    %30 = vector.broadcast %cst_15 : f32 to vector<16x128xf32>
    %31 = arith.select %27, %30, %20 : vector<16x128xi1>, vector<16x128xf32>
    %c2_16 = arith.constant 2 : index
    %c0_17 = arith.constant 0 : index
    %c0_18 = arith.constant 0 : index
    %32 = vector.load %arg1[%c2_16, %c0_17, %c0_18] : memref<3x16x128xf32, #tpu.memory_space<vmem>>, vector<1x16x128xf32>
    %33 = vector.shape_cast %32 : vector<1x16x128xf32> to vector<16x128xf32>
    %34 = arith.subf %33, %8 : vector<16x128xf32>
    %35 = math.exp %34 : vector<16x128xf32>
    %36 = arith.addf %25, %35 : vector<16x128xf32>
    %c2_i32 = arith.constant 2 : i32
    %37 = vector.broadcast %c2_i32 : i32 to vector<16x128xi32>
    %38 = arith.cmpi eq, %0, %37 : vector<16x128xi32>
    %39 = arith.select %38, %34, %28 : vector<16x128xi1>, vector<16x128xf32>
    %40 = arith.select %38, %35, %29 : vector<16x128xi1>, vector<16x128xf32>
    %cst_19 = arith.constant 7.500000e-01 : f32
    %41 = vector.broadcast %cst_19 : f32 to vector<16x128xf32>
    %42 = arith.select %38, %41, %31 : vector<16x128xi1>, vector<16x128xf32>
    %43 = math.log %36 : vector<16x128xf32>
    %44 = arith.subf %39, %43 : vector<16x128xf32>
    %45 = arith.divf %40, %36 : vector<16x128xf32>
    %cst_20 = arith.constant 1.000000e+00 : f32
    %46 = vector.broadcast %cst_20 : f32 to vector<16x128xf32>
    %47 = arith.subf %46, %45 : vector<16x128xf32>
    %cst_21 = arith.constant 0.000000e+00 : f32
    %48 = vector.broadcast %cst_21 : f32 to vector<16x128xf32>
    %49 = arith.maximumf %47, %48 : vector<16x128xf32>
    %50 = arith.mulf %49, %49 : vector<16x128xf32>
    %51 = arith.mulf %42, %50 : vector<16x128xf32>
    %52 = arith.mulf %51, %44 : vector<16x128xf32>
    %cst_22 = arith.constant 0.000000e+00 : f32
    %53 = vector.broadcast %cst_22 : f32 to vector<16x128xf32>
    %54 = arith.subf %53, %52 : vector<16x128xf32>
    %c2048_i32 = arith.constant 2048 : i32
    %55 = arith.muli %arg0, %c2048_i32 : i32
    %56 = tpu.iota {dimensions = array<i32: 0>} : vector<16x128xi32>
    %c128_i32 = arith.constant 128 : i32
    %57 = vector.broadcast %c128_i32 : i32 to vector<16x128xi32>
    %58 = arith.muli %56, %57 : vector<16x128xi32>
    %59 = vector.broadcast %55 : i32 to vector<16x128xi32>
    %60 = arith.addi %59, %58 : vector<16x128xi32>
    %61 = tpu.iota {dimensions = array<i32: 1>} : vector<16x128xi32>
    %62 = arith.addi %60, %61 : vector<16x128xi32>
    %c16_i32 = arith.constant 16 : i32
    %63 = vector.broadcast %c16_i32 : i32 to vector<16x128xi32>
    %64 = arith.cmpi slt, %62, %63 : vector<16x128xi32>
    %cst_23 = arith.constant 0.000000e+00 : f32
    %65 = vector.broadcast %cst_23 : f32 to vector<16x128xf32>
    %66 = arith.select %64, %54, %65 : vector<16x128xi1>, vector<16x128xf32>
    %67 = vector.shape_cast %66 : vector<16x128xf32> to vector<2x8x128xf32>
    %cst_24 = arith.constant dense<0.000000e+00> : vector<8x128xf32>
    %68 = vector.multi_reduction <add>, %67, %cst_24 [0] : vector<2x8x128xf32> to vector<8x128xf32>
    %c0_25 = arith.constant 0 : index
    %c0_26 = arith.constant 0 : index
    %69 = vector.load %arg3[%c0_25, %c0_26] : memref<8x128xf32, #tpu.memory_space<vmem>>, vector<8x128xf32>
    tpu.vector_store %arg3[%c0_25, %c0_26], %68 {strides = array<i32>} : memref<8x128xf32, #tpu.memory_space<vmem>>, vector<8x128xf32>,
    return
  }
  func.func @transform_0(%arg0: i32) -> (i32, i32, i32) {
    %c0_i32 = arith.constant 0 : i32
    %c0_i32_0 = arith.constant 0 : i32
    %c0_i32_1 = arith.constant 0 : i32
    return %c0_i32, %arg0, %c0_i32_0 : i32, i32, i32
  }
  func.func @transform_1(%arg0: i32) -> (i32, i32) {
    %c0_i32 = arith.constant 0 : i32
    %c0_i32_0 = arith.constant 0 : i32
    return %arg0, %c0_i32 : i32, i32
  }
  func.func @transform_2(%arg0: i32) -> (i32, i32) {
    %c0_i32 = arith.constant 0 : i32
    %c0_i32_0 = arith.constant 0 : i32
    return %arg0, %c0_i32 : i32, i32
  }
}

</mosaic_0001>

<bundles_post_ra>
// kernel: tpu_custom_call.1
= control target key start
LH: loop header
LB: loop body
LE: loop exit
PB: predicated region body
PF: predicated region fallthrough
CT: control target
= control target key end

     0   :  { %7 = vsyncpa [#allocation3], 0  ;;  %s340_s0 = inlined_call_operand.hbm [shape: f32[3,16,128], index: 0, kind: input, shape index: {}]   ;;  %s341_s1 = inlined_call_operand.hbm [shape: s32[16,128], index: 1, kind: input, shape index: {}]   ;;  %s342_s2 = inlined_call_operand.hbm [shape: f32[8,128], index: 2, kind: output, shape index: {}]  }
   0x1   :  { %8 = vsyncpa [#allocation6], 0 }
   0x2   :  { %9 = vsyncpa [#allocation4], 0  ;;  %s257_s9 = smov [#allocation2]   ;;  %s185_s13 = scalar_lea.hbm %s340_s0, 768 }
   0x3   :  { %s15_s10 = sshll.u32 %s257_s9, 4  ;;  %p186_p0 = scmp.ne.s32.totalorder %s340_s0, %s185_s13  ;;  %s16_s10 = int_to_ptr.vmem [resolvable:$true] %s15_s10 }
   0x4   :  { %p189_p1 = scmp.lt.u32.totalorder %s185_s13, %s340_s0 }
   0x6   :  { %p191_p2 = pnand %p189_p1, %p186_p0 }
   0x8   :  { %194 = shalt.err (!%p191_p2)
}
   0x9   :  { %s195_s18 = scalar_lea.vmem %s16_s10, 768  ;;  %p200_p4 = scmp.lt.s32.totalorder %s16_s10, %s16_s10 }
   0xa   :  { %p196_p3 = scmp.ne.s32.totalorder %s16_s10, %s195_s18  ;;  %p201_p5 = scmp.lt.s32.totalorder %s195_s18, %s195_s18 }
   0xc   :  { %p202_p6 = por %p201_p5, %p200_p4 }
   0xe   :  { %p203_p7 = pnand %p202_p6, %p196_p3 }
  0x10   :  { %206 = shalt.err (!%p203_p7)
}
  0x11   :  { %s258_s19 = smov 128   ;;  %s259_s20 = smov 8  }
  0x12   :  { %21 = dma.hbm_to_vmem [thread:$0]  %s340_s0, 768, %s16_s10, [#allocation3], %s258_s19, %s258_s19, %s259_s20  }
  0x13   :  { %s260_s23 = smov [#allocation5]   ;;  %s207_s27 = scalar_lea.hbm %s341_s1, 256 }
  0x14   :  { %s27_s24 = sshll.u32 %s260_s23, 4  ;;  %p208_p8 = scmp.ne.s32.totalorder %s341_s1, %s207_s27  ;;  %s28_s24 = int_to_ptr.vmem [resolvable:$true] %s27_s24 }
  0x15   :  { %p211_p9 = scmp.lt.u32.totalorder %s207_s27, %s341_s1 }
  0x17   :  { %p213_p10 = pnand %p211_p9, %p208_p8 }
  0x19   :  { %216 = shalt.err (!%p213_p10)
}
  0x1a   :  { %s217_s4 = scalar_lea.vmem %s28_s24, 256  ;;  %p222_p12 = scmp.lt.s32.totalorder %s28_s24, %s28_s24 }
  0x1b   :  { %p218_p11 = scmp.ne.s32.totalorder %s28_s24, %s217_s4  ;;  %p223_p13 = scmp.lt.s32.totalorder %s217_s4, %s217_s4 }
  0x1d   :  { %p224_p0 = por %p223_p13, %p222_p12 }
  0x1f   :  { %p225_p1 = pnand %p224_p0, %p218_p11 }
  0x21   :  { %228 = shalt.err (!%p225_p1)
}
  0x22   :  { %33 = dma.hbm_to_vmem [thread:$0]  %s341_s1, 256, %s28_s24, [#allocation6], %s258_s19, %s258_s19, %s259_s20  }
  0x23   :  { %251 = dma.done.wait [#allocation3], 768  }
  0x24   :  { %252 = vsyncadd [#allocation3], 4294966528 }
  0x25   :  { %253 = dma.done.wait [#allocation6], 256  }
  0x26   :  { %254 = vsyncadd [#allocation6], 4294967040  ;;  %v42_v0 = vld [vmem:[#allocation2] sm:$0xff]  ;;  %v43_v1 = vld [vmem:[#allocation2 + $0x8] sm:$0xff]  ;;  %v125_v36 = vlaneseq  ;;  %v261_v47 = vmov 0.0   ;;  %s262_s1 = smov [#allocation7]  }
  0x27   :  { %v45_v2 = vld [vmem:[#allocation2 + $0x10] sm:$0xff]  ;;  %v46_v3 = vld [vmem:[#allocation2 + $0x18] sm:$0xff]  ;;  %v50_v6 = vld [vmem:[#allocation2 + $0x20] sm:$0xff]  ;;  %s149_s6 = sshll.u32 %s262_s1, 4  ;;  %s150_s6 = int_to_ptr.vmem [resolvable:$true] %s149_s6 }
  0x28   :  { %v47_v4 = vmax.f32 %v42_v0, %v45_v2  ;;  %v48_v5 = vmax.f32 %v43_v1, %v46_v3  ;;  %v51_v7 = vld [vmem:[#allocation2 + $0x28] sm:$0xff]  ;;  %v40_v30 = vld [vmem:[#allocation5] sm:$0xff]  ;;  %v41_v32 = vld [vmem:[#allocation5 + $0x8] sm:$0xff]  ;;  %v126_v39 = vshrl.u32 %v125_v36, 7  ;;  %v134_v56 = vand.u32 127, %v125_v36  ;;  %s229_s7 = scalar_lea.vmem %s150_s6, 128  ;;  %p234_p3 = scmp.lt.s32.totalorder %s150_s6, %s150_s6 }
  0x29   :  { %vm62_vm0 = vcmp.eq.s32.totalorder %v40_v30, 0  ;;  %vm63_vm1 = vcmp.eq.s32.totalorder %v41_v32, 0  ;;  %vm78_vm2 = vcmp.eq.s32.totalorder %v40_v30, 1  ;;  %vm79_vm3 = vcmp.eq.s32.totalorder %v41_v32, 1  ;;  %p230_p2 = scmp.ne.s32.totalorder %s150_s6, %s229_s7  ;;  %p235_p4 = scmp.lt.s32.totalorder %s229_s7, %s229_s7 }
  0x2a   :  { %v52_v8 = vmax.f32 %v47_v4, %v50_v6  ;;  %v53_v9 = vmax.f32 %v48_v5, %v51_v7  ;;  %vm94_vm4 = vcmp.eq.s32.totalorder %v40_v30, 2  ;;  %vm95_vm5 = vcmp.eq.s32.totalorder %v41_v32, 2 }
  0x2b   :  { %v68_v48 = vsel %vm62_vm0, 0.25, %v261_v47  ;;  %v69_v50 = vsel %vm63_vm1, 0.25, %v261_v47  ;;  %v127_v53 = vadd.s32 8, %v126_v39  ;;  %v128_v60 = vmul.u32 128, %v126_v39  ;;  %p236_p5 = por %p235_p4, %p234_p3 }
  0x2c   :  { %v54_v10 = vsub.f32 %v42_v0, %v52_v8  ;;  %v55_v11 = vsub.f32 %v43_v1, %v53_v9  ;;  %v70_v12 = vsub.f32 %v45_v2, %v52_v8  ;;  %v71_v13 = vsub.f32 %v46_v3, %v53_v9 }
  0x2d   :  { %v302_v14 = vsub.f32 %v50_v6, %v52_v8  ;;  %v304_v15 = vsub.f32 %v51_v7, %v53_v9  ;;  %v84_v57 = vsel %vm78_vm2, 0.75, %v68_v48  ;;  %v85_v61 = vsel %vm79_vm3, 0.75, %v69_v50  ;;  %p237_p6 = pnand %p236_p5, %p230_p2 }
  0x2e   :  { %v56_v16 = vmul.f32 1.442695, %v54_v10  ;;  %v58_v17 = vmul.f32 1.442695, %v55_v11  ;;  %v72_v18 = vmul.f32 1.442695, %v70_v12 }
  0x2f   :  { %v74_v19 = vmul.f32 1.442695, %v71_v13  ;;  %v88_v20 = vmul.f32 1.442695, %v302_v14  ;;  %v90_v21 = vmul.f32 1.442695, %v304_v15 }
  0x30   :  { %165 = vpow2.f32 %v56_v16  ;;  %v64_v41 = vsel %vm62_vm0, %v54_v10, 0.0  ;;  %v65_v44 = vsel %vm63_vm1, %v55_v11, 0.0  ;;  %v129_v3 = vmul.u32 128, %v127_v53 }
  0x31   :  { %167 = vpow2.f32 %v58_v17  ;;  %v80_v51 = vsel %vm78_vm2, %v70_v12, %v64_v41  ;;  %v81_v54 = vsel %vm79_vm3, %v71_v13, %v65_v44  ;;  %v100_v4 = vsel %vm94_vm4, 0.75, %v84_v57 }
  0x32   :  { %169 = vpow2.f32 %v72_v18  ;;  %v96_v62 = vsel %vm94_vm4, %v302_v14, %v80_v51  ;;  %v97_v1 = vsel %vm95_vm5, %v304_v15, %v81_v54  ;;  %v101_v6 = vsel %vm95_vm5, 0.75, %v85_v61 }
  0x33   :  { %171 = vpow2.f32 %v74_v19  ;;  %v135_v11 = vadd.s32 %v134_v56, %v128_v60  ;;  %v136_v13 = vadd.s32 %v134_v56, %v129_v3 }
  0x34   :  { %173 = vpow2.f32 %v88_v20 }
  0x35   :  { %175 = vpow2.f32 %v90_v21  ;;  %vm137_vm6 = vcmp.lt.s32.totalorder %v135_v11, 16  ;;  %vm138_vm7 = vcmp.lt.s32.totalorder %v136_v13, 16 }
  0x3a   :  { %v166_v22 = vpop.eup %165 }
  0x3b   :  { %v168_v23 = vpop.eup %167  ;;  %v66_v34 = vsel %vm62_vm0, %v166_v22, 0.0 }
  0x3c   :  { %v170_v24 = vpop.eup %169  ;;  %v67_v35 = vsel %vm63_vm1, %v168_v23, 0.0 }
  0x3d   :  { %v172_v25 = vpop.eup %171  ;;  %v76_v26 = vadd.f32 %v170_v24, %v166_v22  ;;  %v82_v37 = vsel %vm78_vm2, %v170_v24, %v66_v34 }
  0x3e   :  { %v174_v27 = vpop.eup %173  ;;  %v77_v28 = vadd.f32 %v172_v25, %v168_v23  ;;  %v83_v38 = vsel %vm79_vm3, %v172_v25, %v67_v35 }
  0x3f   :  { %v176_v29 = vpop.eup %175  ;;  %v92_v31 = vadd.f32 %v174_v27, %v76_v26  ;;  %v98_v42 = vsel %vm94_vm4, %v174_v27, %v82_v37 }
  0x40   :  { %v93_v33 = vadd.f32 %v176_v29, %v77_v28  ;;  %v99_v45 = vsel %vm95_vm5, %v176_v29, %v83_v38 }
  0x41   :  { %177 = vlog2.f32 %v92_v31 }
  0x42   :  { %179 = vlog2.f32 %v93_v33 }
  0x43   :  { %181 = vrcp.f32 %v92_v31 }
  0x44   :  { %183 = vrcp.f32 %v93_v33 }
  0x4b   :  { %v178_v40 = vpop.eup %177 }
  0x4c   :  { %v180_v43 = vpop.eup %179  ;;  %v103_v58 = vmul.f32 0.6931472, %v178_v40 }
  0x4d   :  { %v182_v46 = vpop.eup %181  ;;  %v105_v63 = vmul.f32 0.6931472, %v180_v43 }
  0x4e   :  { %v184_v49 = vpop.eup %183  ;;  %v109_v52 = vmul.f32 %v182_v46, %v98_v42  ;;  %v106_v7 = vsub.f32 %v96_v62, %v103_v58 }
  0x4f   :  { %v111_v55 = vmul.f32 %v184_v49, %v99_v45  ;;  %v107_v9 = vsub.f32 %v97_v1, %v105_v63 }
  0x50   :  { %v112_v59 = vsub.f32 1.0, %v109_v52 }
  0x51   :  { %v113_v0 = vsub.f32 1.0, %v111_v55 }
  0x52   :  { %v114_v2 = vmax.f32 %v112_v59, 0.0 }
  0x53   :  { %v115_v5 = vmax.f32 %v113_v0, 0.0 }
  0x54   :  { %v116_v8 = vmul.f32 %v114_v2, %v114_v2 }
  0x55   :  { %v117_v10 = vmul.f32 %v115_v5, %v115_v5 }
  0x56   :  { %v118_v12 = vmul.f32 %v116_v8, %v100_v4 }
  0x57   :  { %v119_v14 = vmul.f32 %v117_v10, %v101_v6 }
  0x58   :  { %v120_v16 = vmul.f32 %v118_v12, %v106_v7 }
  0x59   :  { %v121_v17 = vmul.f32 %v119_v14, %v107_v9 }
  0x5a   :  { %v122_v18 = vsub.f32 0.0, %v120_v16 }
  0x5b   :  { %v123_v15 = vsub.f32 0.0, %v121_v17 }
  0x5c   :  { %v139_v19 = vsel %vm137_vm6, %v122_v18, 0.0 }
  0x5d   :  { %v140_v20 = vsel %vm138_vm7, %v123_v15, 0.0 }
  0x5e   :  { %v141_v21 = vadd.f32 %v140_v20, %v139_v19 }
  0x60   :  { %142 = vst [vmem:[#allocation7] sm:$0xff] %v141_v21 }
  0x61   :  { %240 = shalt.err (!%p237_p6)
}
  0x62   :  { %s241_s10 = scalar_lea.hbm %s342_s2, 128 }
  0x63   :  { %p242_p7 = scmp.ne.s32.totalorder %s342_s2, %s241_s10  ;;  %p245_p8 = scmp.lt.u32.totalorder %s241_s10, %s342_s2 }
  0x65   :  { %p247_p9 = pnand %p245_p8, %p242_p7 }
  0x67   :  { %250 = shalt.err (!%p247_p9)
}
  0x68   :  { %152 = dma.vmem_to_hbm [thread:$0]  %s150_s6, 128, %s342_s2, [#allocation4]  }
  0x69   :  { %255 = dma.done.wait [#allocation4], 128  }
  0x6a   :  { %256 = vsyncadd [#allocation4], 4294967168 }
  0x6b   :  { %156 = vsyncpa [#allocation3], 1 }
  0x6c   :  { %157 = vsyncpa [#allocation6], 1 }
  0x6d   :  { %158 = vsyncpa [#allocation4], 1 }

</bundles_post_ra>
